<compile_context>
chip_gen: v7x
topology: tpu7x:2x2x1
jax: 0.10.0
libtpu: 0.0.40
codegen_flags: <defaults>
</compile_context>

<pallas_src>
import functools

import jax
import jax.numpy as jnp
from jax import lax
from jax.experimental import pallas as pl
from jax.experimental.pallas import tpu as pltpu


# --------------------------------------------------------------------------- #
# helpers
# --------------------------------------------------------------------------- #
def _round_up(a: int, b: int) -> int:
    return (a + b - 1) // b * b


def _min_sublane(dtype) -> int:
    # Minimum sublane tile: 8 for 4-byte, 16 for 2-byte, 32 for 1-byte dtypes.
    return {4: 8, 2: 16, 1: 32}.get(jnp.dtype(dtype).itemsize, 8)


def _pick_tile(total: int, pref: int) -> int:
    """total is a multiple of 128; prefer large 256-multiples (v6e/v7x MXU)."""
    if total <= pref:
        return total
    for t in (pref, 512, 256, 128):
        if t <= total and total % t == 0:
            return t
    return 128


# --------------------------------------------------------------------------- #
# Stage 1 kernel: W_eff^T tile = onehot_t @ W^T tile  (gather folded into weight)
# --------------------------------------------------------------------------- #
def build_weff_kernel(idx_ref, wt_ref, weff_ref):
    # idx_ref  : (1, drop_p)    int32  (full, zero-padded index buffer)
    # wt_ref   : (drop_p, TO)   one out-tile of the zero-padded transposed weight
    # weff_ref : (TKw, TO)      one (in, out) tile of W_eff^T
    tkw = weff_ref.shape[0]
    drop_p = wt_ref.shape[0]
    col0 = pl.program_id(1) * tkw

    # onehot_t[c, d] = (index[d] == col0 + c); 0/1 entries are exact in any dtype.
    rows = lax.broadcasted_iota(jnp.int32, (tkw, drop_p), 0) + col0
    onehot_t = (rows == idx_ref[...]).astype(wt_ref.dtype)          # (TKw, drop_p)

    # Canonical contraction ((1,),(0,)): no operand transpose for the MXU.
    weff = lax.dot_general(
        onehot_t, wt_ref[...],
        dimension_numbers=(((1,), (0,)), ((), ())),
        preferred_element_type=jnp.float32)
    weff_ref[...] = weff.astype(weff_ref.dtype)


def build_condensed_weight(weight, index, in_features, *, to=512, tkw=512):
    """Build W_eff^T (in_p, out_p) once per (weight, index). Cache the result."""
    out_f, drop_in = weight.shape
    out_p = _round_up(out_f, 128)
    in_p = _round_up(in_features, 128)
    drop_p = _round_up(drop_in, 128)
    TO = _pick_tile(out_p, to)
    TKw = _pick_tile(in_p, tkw)

    # One-time transposes / pads outside the hot path.
    w_t = jnp.zeros((drop_p, out_p), weight.dtype).at[:drop_in, :out_f].set(weight.T)
    idx_p = jnp.zeros((1, drop_p), jnp.int32).at[0, :drop_in].set(index.astype(jnp.int32))

    return pl.pallas_call(
        build_weff_kernel,
        out_shape=jax.ShapeDtypeStruct((in_p, out_p), weight.dtype),
        grid=(out_p // TO, in_p // TKw),
        in_specs=[
            pl.BlockSpec((1, drop_p), lambda o, k: (0, 0)),
            pl.BlockSpec((drop_p, TO), lambda o, k: (0, o)),
        ],
        out_specs=pl.BlockSpec((TKw, TO), lambda o, k: (k, o)),
        compiler_params=pltpu.CompilerParams(
            dimension_semantics=("parallel", "parallel"),
            vmem_limit_bytes=48 * 1024 * 1024,
        ),
    )(idx_p, w_t)


# --------------------------------------------------------------------------- #
# Stage 2 kernels: tiled y = x @ W_eff^T + b
# --------------------------------------------------------------------------- #
def _mm(xv, wv, compute_dtype):
    if compute_dtype is not None:             # optional bf16 MXU path
        xv = xv.astype(compute_dtype)
        wv = wv.astype(compute_dtype)
    return lax.dot_general(xv, wv,
                           dimension_numbers=(((1,), (0,)), ((), ())),
                           preferred_element_type=jnp.float32)


def matmul_bias_kernel(x_ref, w_ref, b_ref, o_ref, acc_ref, *, compute_dtype=None):
    # x_ref: (TM, TK)  w_ref: (TK, TN)  b_ref: (1, TN)  o_ref: (TM, TN)  acc: f32
    k = pl.program_id(2)

    @pl.when(k == 0)
    def _():
        acc_ref[...] = jnp.zeros_like(acc_ref)

    acc_ref[...] += _mm(x_ref[...], w_ref[...], compute_dtype)

    @pl.when(k == pl.num_programs(2) - 1)
    def _():
        o_ref[...] = (acc_ref[...] + b_ref[...].astype(jnp.float32)).astype(o_ref.dtype)


def matmul_bias_single_k_kernel(x_ref, w_ref, b_ref, o_ref, *, compute_dtype=None):
    # Whole reduction in one tile: no accumulator scratch, write straight out.
    o_ref[...] = (_mm(x_ref[...], w_ref[...], compute_dtype)
                  + b_ref[...].astype(jnp.float32)).astype(o_ref.dtype)


def condensed_matmul(x, w_eff_t, bias, out_features, *,
                     tm=512, tn=512, tk=512, compute_dtype=None):
    """y = x @ W_eff^T + b using the precomputed transposed effective weight."""
    N, in_f = x.shape
    in_p, out_p = w_eff_t.shape
    dt = x.dtype

    sub = _min_sublane(dt)
    TM = min(tm, _round_up(N, sub))
    N_p = _round_up(N, TM)
    TN = _pick_tile(out_p, tn)
    TK = _pick_tile(in_p, tk)
    # Megacore (v7x): if the batch axis has a single tile and the out axis would
    # too, split the out tile so both TensorCores get work.
    if N_p == TM and out_p == TN and out_p % 256 == 0:
        TN = out_p // 2

    # Zero-pad x (padding contributes exactly 0); bias padded to lane width.
    if N_p == N and in_p == in_f:
        x_p = x
    else:
        x_p = jnp.zeros((N_p, in_p), dt).at[:N, :in_f].set(x)
    b_p = jnp.zeros((1, out_p), bias.dtype).at[0, :out_features].set(bias)

    n_k = in_p // TK
    vmem_limit = 48 * 1024 * 1024
    if n_k == 1:
        y_p = pl.pallas_call(
            functools.partial(matmul_bias_single_k_kernel, compute_dtype=compute_dtype),
            out_shape=jax.ShapeDtypeStruct((N_p, out_p), dt),
            grid=(N_p // TM, out_p // TN),
            in_specs=[
                pl.BlockSpec((TM, TK), lambda i, j: (i, 0)),
                pl.BlockSpec((TK, TN), lambda i, j: (0, j)),
                pl.BlockSpec((1, TN), lambda i, j: (0, j)),
            ],
            out_specs=pl.BlockSpec((TM, TN), lambda i, j: (i, j)),
            compiler_params=pltpu.CompilerParams(
                dimension_semantics=("parallel", "parallel"),
                vmem_limit_bytes=vmem_limit,
            ),
        )(x_p, w_eff_t, b_p)
    else:
        y_p = pl.pallas_call(
            functools.partial(matmul_bias_kernel, compute_dtype=compute_dtype),
            out_shape=jax.ShapeDtypeStruct((N_p, out_p), dt),
            grid_spec=pltpu.PrefetchScalarGridSpec(
                num_scalar_prefetch=0,
                grid=(N_p // TM, out_p // TN, n_k),
                in_specs=[
                    pl.BlockSpec((TM, TK), lambda i, j, k: (i, k)),   # x tile
                    pl.BlockSpec((TK, TN), lambda i, j, k: (k, j)),   # W_eff^T tile
                    pl.BlockSpec((1, TN), lambda i, j, k: (0, j)),    # bias tile
                ],
                out_specs=pl.BlockSpec((TM, TN), lambda i, j, k: (i, j)),
                scratch_shapes=[pltpu.VMEM((TM, TN), jnp.float32)],
            ),
            compiler_params=pltpu.CompilerParams(
                dimension_semantics=("parallel", "parallel", "arbitrary"),
                vmem_limit_bytes=vmem_limit,
            ),
        )(x_p, w_eff_t, b_p)

    return y_p[:N, :out_features]


# --------------------------------------------------------------------------- #
# Convenience wrapper (builds W_eff^T only if not provided / cached)
# --------------------------------------------------------------------------- #
def condense_linear(x, index, weight, bias, *, w_eff_t=None, **kwargs):
    """x: (N, in_features); index: (drop_in,); weight: (out_f, drop_in); bias: (out_f,).

    For inference, call build_condensed_weight(...) once per (weight, index) and
    pass the cached result as w_eff_t so the hot path is a single matmul kernel.
    """
    out_f = weight.shape[0]
    in_f = x.shape[1]
    if w_eff_t is None:
        w_eff_t = build_condensed_weight(weight, index, in_f)
    return condensed_matmul(x, w_eff_t, bias, out_f, **kwargs)


def _reference(x, index, weight, bias):
    return jnp.take(x, index, axis=1) @ weight.T + bias


if __name__ == "__main__":
    key = jax.random.PRNGKey(0)

    # --- Case 1: small shapes consistent with CondenseLinear(32, 16, 0.5) ----
    in_features, out_features, drop_rate, batch = 32, 16, 0.5, 8
    drop_in = int(in_features * drop_rate)  # 16

    k1, k2, k3, key = jax.random.split(key, 4)
    x = jax.random.normal(k1, (batch, in_features), dtype=jnp.float32)
    weight = jax.random.normal(k2, (out_features, drop_in), dtype=jnp.float32) * 0.1
    bias = jax.random.normal(k3, (out_features,), dtype=jnp.float32) * 0.1
    index = jnp.zeros((drop_in,), dtype=jnp.int32)  # module fills the buffer with 0

    # Build the effective weight ONCE (this is module state), reuse per forward.
    w_eff_t = jax.block_until_ready(build_condensed_weight(weight, index, in_features))
    out = jax.block_until_ready(
        condense_linear(x, index, weight, bias, w_eff_t=w_eff_t))
    ref = _reference(x, index, weight, bias)
    assert out.shape == (batch, out_features)
    assert jnp.allclose(out, ref, atol=1e-4, rtol=1e-4), "mismatch vs reference (small)"

    # --- Case 2: multi-tile grid (exercises N/out/K tiling + accumulation) ---
    in_features2, out_features2, batch2 = 1024, 160, 512
    drop_in2 = in_features2 // 2

    k1, k2, k3, k4, key = jax.random.split(key, 5)
    x2 = jax.random.normal(k1, (batch2, in_features2), dtype=jnp.float32)
    weight2 = jax.random.normal(k2, (out_features2, drop_in2), dtype=jnp.float32) * 0.05
    bias2 = jax.random.normal(k3, (out_features2,), dtype=jnp.float32) * 0.05
    index2 = jax.random.randint(k4, (drop_in2,), 0, in_features2, dtype=jnp.int32)

    out2 = jax.block_until_ready(condense_linear(x2, index2, weight2, bias2))
    ref2 = _reference(x2, index2, weight2, bias2)
    assert out2.shape == (batch2, out_features2)
    assert jnp.allclose(out2, ref2, atol=1e-3, rtol=1e-3), "mismatch vs reference (tiled)"

    print("KERNEL_OK")
</pallas_src>

<mosaic_0001>
module attributes {stable_mosaic.version = 11 : i64} {
  func.func @build_weff_kernel(%arg0: i32, %arg1: i32, %arg2: memref<1x128xi32, #tpu.memory_space<vmem>>, %arg3: memref<128x128xf32, #tpu.memory_space<vmem>>, %arg4: memref<128x128xf32, #tpu.memory_space<vmem>>) attributes {dimension_semantics = [#tpu.dimension_semantics<parallel>, #tpu.dimension_semantics<parallel>], iteration_bounds = array<i64: 1, 1>, scalar_prefetch = 0 : i64, scratch_operands = 0 : i64, tpu.core_type = #tpu.core_type<tc>, window_params = [{pipeline_mode = #tpu.pipeline_mode<synchronous>, transform_indices = @transform_0, window_bounds = array<i64: 1, 128>}, {transform_indices = @transform_1, window_bounds = array<i64: 128, 128>}, {transform_indices = @transform_2, window_bounds = array<i64: 128, 128>}]} {
    %c128_i32 = arith.constant 128 : i32
    %0 = arith.muli %arg1, %c128_i32 : i32
    %1 = tpu.iota {dimensions = array<i32: 0>} : vector<128x128xi32>
    %2 = vector.broadcast %0 : i32 to vector<128x128xi32>
    %3 = arith.addi %1, %2 : vector<128x128xi32>
    %c0 = arith.constant 0 : index
    %c0_0 = arith.constant 0 : index
    %4 = vector.load %arg2[%c0, %c0_0] : memref<1x128xi32, #tpu.memory_space<vmem>>, vector<1x128xi32>
    %5 = vector.broadcast %4 : vector<1x128xi32> to vector<128x128xi32>
    %6 = arith.cmpi eq, %3, %5 : vector<128x128xi32>
    %7 = arith.extui %6 : vector<128x128xi1> to vector<128x128xi32>
    %8 = arith.sitofp %7 : vector<128x128xi32> to vector<128x128xf32>
    %c0_1 = arith.constant 0 : index
    %c0_2 = arith.constant 0 : index
    %9 = vector.load %arg3[%c0_1, %c0_2] : memref<128x128xf32, #tpu.memory_space<vmem>>, vector<128x128xf32>
    %cst = arith.constant dense<0.000000e+00> : vector<128x128xf32>
    %10 = tpu.matmul %8, %9, %cst {dimension_numbers = #tpu.dot_dimension_numbers<[1], [0], [0], [1], [0, 0, 1, 1], [], []>} : vector<128x128xf32>, vector<128x128xf32>, vector<128x128xf32> -> vector<128x128xf32>
    %c0_3 = arith.constant 0 : index
    %c0_4 = arith.constant 0 : index
    %11 = vector.load %arg4[%c0_3, %c0_4] : memref<128x128xf32, #tpu.memory_space<vmem>>, vector<128x128xf32>
    tpu.vector_store %arg4[%c0_3, %c0_4], %10 {strides = array<i32>} : memref<128x128xf32, #tpu.memory_space<vmem>>, vector<128x128xf32>,
    return
  }
  func.func @transform_0(%arg0: i32, %arg1: i32) -> (i32, i32) {
    %c0_i32 = arith.constant 0 : i32
    %c0_i32_0 = arith.constant 0 : i32
    %c0_i32_1 = arith.constant 0 : i32
    return %c0_i32, %c0_i32_0 : i32, i32
  }
  func.func @transform_1(%arg0: i32, %arg1: i32) -> (i32, i32) {
    %c0_i32 = arith.constant 0 : i32
    %c0_i32_0 = arith.constant 0 : i32
    return %c0_i32, %arg0 : i32, i32
  }
  func.func @transform_2(%arg0: i32, %arg1: i32) -> (i32, i32) {
    %c0_i32 = arith.constant 0 : i32
    return %arg1, %arg0 : i32, i32
  }
}

</mosaic_0001>

<bundles_post_ra>
// kernel: tpu_custom_call.1
= control target key start
LH: loop header
LB: loop body
LE: loop exit
PB: predicated region body
PF: predicated region fallthrough
CT: control target
= control target key end

     0   :  { %7 = vsyncpa [#allocation3], 0  ;;  %s690_s0 = inlined_call_operand.hbm [shape: s32[1,128], index: 0, kind: input, shape index: {}]   ;;  %s691_s1 = inlined_call_operand.hbm [shape: f32[128,128], index: 1, kind: input, shape index: {}]   ;;  %s692_s2 = inlined_call_operand.hbm [shape: f32[128,128], index: 2, kind: output, shape index: {}]  }
   0x1   :  { %8 = vsyncpa [#allocation6], 0 }
   0x2   :  { %9 = vsyncpa [#allocation4], 0  ;;  %s568_s9 = smov [#allocation2]   ;;  %s569_s11 = smov [#allocation5]  }
   0x3   :  { %s16_s10 = sshll.u32 %s568_s9, 4  ;;  %s25_s12 = sshll.u32 %s569_s11, 4  ;;  %s17_s10 = int_to_ptr.vmem [resolvable:$true] %s16_s10  ;;  %s589_s12 = int_to_ptr.vmem [resolvable:$true] %s25_s12 }
   0x4   :  { %s496_s15 = scalar_lea.hbm %s690_s0, 16 }
   0x5   :  { %p497_p0 = scmp.ne.s32.totalorder %s690_s0, %s496_s15  ;;  %p500_p1 = scmp.lt.u32.totalorder %s496_s15, %s690_s0 }
   0x7   :  { %p502_p2 = pnand %p500_p1, %p497_p0 }
   0x9   :  { %505 = shalt.err (!%p502_p2)
}
   0xa   :  { %s506_s20 = scalar_lea.vmem %s17_s10, 16  ;;  %s510_s21 = scalar_lea.vmem %s17_s10, 32 }
   0xb   :  { %p507_p3 = scmp.ne.s32.totalorder %s17_s10, %s506_s20  ;;  %p511_p4 = scmp.lt.s32.totalorder %s17_s10, %s17_s10 }
   0xc   :  { %p512_p5 = scmp.lt.s32.totalorder %s510_s21, %s506_s20 }
   0xe   :  { %p513_p6 = por %p512_p5, %p511_p4 }
  0x10   :  { %p514_p7 = pnand %p513_p6, %p507_p3 }
  0x12   :  { %517 = shalt.err (!%p514_p7)
}
  0x13   :  { %19 = dma.hbm_to_vmem [thread:$0]  %s690_s0, 16, %s17_s10, [#allocation3]  }
  0x14   :  { %s518_s26 = scalar_lea.hbm %s691_s1, 2048 }
  0x15   :  { %p519_p8 = scmp.ne.s32.totalorder %s691_s1, %s518_s26  ;;  %p522_p9 = scmp.lt.u32.totalorder %s518_s26, %s691_s1 }
  0x17   :  { %p524_p10 = pnand %p522_p9, %p519_p8 }
  0x19   :  { %527 = shalt.err (!%p524_p10)
}
  0x1a   :  { %s528_s3 = scalar_lea.vmem %s589_s12, 2048  ;;  %p533_p12 = scmp.lt.s32.totalorder %s589_s12, %s589_s12 }
  0x1b   :  { %p529_p11 = scmp.ne.s32.totalorder %s589_s12, %s528_s3  ;;  %p534_p13 = scmp.lt.s32.totalorder %s528_s3, %s528_s3 }
  0x1d   :  { %p535_p0 = por %p534_p13, %p533_p12 }
  0x1f   :  { %p536_p1 = pnand %p535_p0, %p529_p11 }
  0x21   :  { %539 = shalt.err (!%p536_p1)
}
  0x22   :  { %s570_s0 = smov 128   ;;  %s571_s4 = smov 8  }
  0x23   :  { %31 = dma.hbm_to_vmem [thread:$0]  %s691_s1, 2048, %s589_s12, [#allocation6], %s570_s0, %s570_s0, %s571_s4  }
  0x24   :  { %562 = dma.done.wait [#allocation3], 16  }
  0x25   :  { %563 = vsyncadd [#allocation3], 4294967280 }
  0x26   :  { %564 = dma.done.wait [#allocation6], 2048  }
  0x27   :  { %565 = vsyncadd [#allocation6], 4294965248  ;;  %v39_v0 = vlaneseq  ;;  %v126_v2 = vld [vmem:[#allocation5] sm:$0xff]  ;;  %v127_v3 = vld [vmem:[#allocation5 + $0x8] sm:$0xff]  ;;  %v572_v15 = vmov 1.0   ;;  %s573_s1 = smov [#allocation7]  }
  0x28   :  { %v128_v4 = vld [vmem:[#allocation5 + $0x10] sm:$0xff]  ;;  %v442_v5 = vpack.c.bf16 %v127_v3, %v126_v2  ;;  %v129_v6 = vld [vmem:[#allocation5 + $0x18] sm:$0xff]  ;;  %v130_v8 = vld [vmem:[#allocation5 + $0x20] sm:$0xff]  ;;  %s308_s7 = sshll.u32 %s573_s1, 4  ;;  %s309_s7 = int_to_ptr.vmem [resolvable:$true] %s308_s7 }
  0x29   :  { %v623_v1 = vshrl.u32 %v39_v0, 7  ;;  %v446_v7 = vpack.c.bf16 %v129_v6, %v128_v4  ;;  %v131_v9 = vld [vmem:[#allocation5 + $0x28] sm:$0xff]  ;;  %v626_v12 = vld [vmem:[#allocation2] ss:$0 sm:$0xff]  ;;  %v132_v13 = vld [vmem:[#allocation5 + $0x30] sm:$0xff]  ;;  %s540_s8 = scalar_lea.vmem %s309_s7, 2048  ;;  %p545_p3 = scmp.lt.s32.totalorder %s309_s7, %s309_s7 }
  0x2a   :  { %443 = vmatprep.subr.bf16.mxu0 %v442_v5  ;;  %474 = vmatprep.subr.bf16.mxu1 %v442_v5  ;;  %v450_v11 = vpack.c.bf16 %v131_v9, %v130_v8  ;;  %v133_v14 = vld [vmem:[#allocation5 + $0x38] sm:$0xff]  ;;  %v134_v17 = vld [vmem:[#allocation5 + $0x40] sm:$0xff]  ;;  %v135_v18 = vld [vmem:[#allocation5 + $0x48] sm:$0xff]  ;;  %p541_p2 = scmp.ne.s32.totalorder %s309_s7, %s540_s8  ;;  %p546_p4 = scmp.lt.s32.totalorder %s540_s8, %s540_s8 }
  0x2b   :  { %v48_v10 = vadd.s32 64, %v623_v1  ;;  %445 = vmatpush3.bf16.msra.mxu0 %v442_v5  ;;  %482 = vmatpush3.bf16.msra.mxu1 %v442_v5  ;;  %vm78_vm0 = vcmp.eq.s32.totalorder %v623_v1, %v626_v12  ;;  %v454_v16 = vpack.c.bf16 %v133_v14, %v132_v13  ;;  %v458_v19 = vpack.c.bf16 %v135_v18, %v134_v17  ;;  %v136_v20 = vld [vmem:[#allocation5 + $0x50] sm:$0xff]  ;;  %v137_v21 = vld [vmem:[#allocation5 + $0x58] sm:$0xff]  ;;  %v138_v23 = vld [vmem:[#allocation5 + $0x60] sm:$0xff] }
  0x2c   :  { %447 = vmatprep.subr.bf16.mxu0 %v446_v7  ;;  %475 = vmatprep.subr.bf16.mxu1 %v446_v7  ;;  %v462_v22 = vpack.c.bf16 %v137_v21, %v136_v20  ;;  %v139_v24 = vld [vmem:[#allocation5 + $0x68] sm:$0xff]  ;;  %v140_v26 = vld [vmem:[#allocation5 + $0x70] sm:$0xff]  ;;  %v141_v27 = vld [vmem:[#allocation5 + $0x78] sm:$0xff]  ;;  %v41_v29 = vadd.s32 8, %v623_v1  ;;  %v49_v30 = vadd.s32 72, %v623_v1  ;;  %v42_v31 = vadd.s32 16, %v623_v1  ;;  %p547_p5 = por %p546_p4, %p545_p3 }
  0x2d   :  { %vm86_vm1 = vcmp.eq.s32.totalorder %v48_v10, %v626_v12  ;;  %418 = vmatprep.mubr.msk.f32.mxu0 %vm78_vm0, %v572_v15  ;;  %v466_v25 = vpack.c.bf16 %v139_v24, %v138_v23  ;;  %v470_v28 = vpack.c.bf16 %v141_v27, %v140_v26  ;;  %v50_v32 = vadd.s32 80, %v623_v1 }
  0x2e   :  { %430 = vmatprep.mubr.msk.f32.mxu1 %vm86_vm1, %v572_v15  ;;  %vm79_vm2 = vcmp.eq.s32.totalorder %v41_v29, %v626_v12  ;;  %vm87_vm3 = vcmp.eq.s32.totalorder %v49_v30, %v626_v12  ;;  %v43_v33 = vadd.s32 24, %v623_v1  ;;  %v51_v34 = vadd.s32 88, %v623_v1  ;;  %p548_p6 = pnand %p547_p5, %p541_p2 }
  0x2f   :  { %449 = vmatpush3.bf16.msra.mxu0 %v446_v7  ;;  %483 = vmatpush3.bf16.msra.mxu1 %v446_v7  ;;  %vm80_vm4 = vcmp.eq.s32.totalorder %v42_v31, %v626_v12  ;;  %vm88_vm5 = vcmp.eq.s32.totalorder %v50_v32, %v626_v12  ;;  %v44_v35 = vadd.s32 32, %v623_v1  ;;  %v52_v36 = vadd.s32 96, %v623_v1 }
  0x30   :  { %451 = vmatprep.subr.bf16.mxu0 %v450_v11  ;;  %476 = vmatprep.subr.bf16.mxu1 %v450_v11  ;;  %vm81_vm6 = vcmp.eq.s32.totalorder %v43_v33, %v626_v12  ;;  %vm89_vm7 = vcmp.eq.s32.totalorder %v51_v34, %v626_v12  ;;  %v45_v37 = vadd.s32 40, %v623_v1  ;;  %v53_v38 = vadd.s32 104, %v623_v1 }
  0x31   :  { %vm82_vm8 = vcmp.eq.s32.totalorder %v44_v35, %v626_v12  ;;  %vm90_vm9 = vcmp.eq.s32.totalorder %v52_v36, %v626_v12  ;;  %v46_v39 = vadd.s32 48, %v623_v1  ;;  %v54_v40 = vadd.s32 112, %v623_v1 }
  0x32   :  { %vm83_vm10 = vcmp.eq.s32.totalorder %v45_v37, %v626_v12  ;;  %vm91_vm11 = vcmp.eq.s32.totalorder %v53_v38, %v626_v12  ;;  %v47_v41 = vadd.s32 56, %v623_v1  ;;  %v55_v42 = vadd.s32 120, %v623_v1 }
  0x33   :  { %453 = vmatpush3.bf16.msra.mxu0 %v450_v11  ;;  %484 = vmatpush3.bf16.msra.mxu1 %v450_v11  ;;  %vm84_vm12 = vcmp.eq.s32.totalorder %v46_v39, %v626_v12  ;;  %vm92_vm13 = vcmp.eq.s32.totalorder %v54_v40, %v626_v12 }
  0x34   :  { %455 = vmatprep.subr.bf16.mxu0 %v454_v16  ;;  %477 = vmatprep.subr.bf16.mxu1 %v454_v16  ;;  %vm85_vm14 = vcmp.eq.s32.totalorder %v47_v41, %v626_v12  ;;  %vm93_vm15 = vcmp.eq.s32.totalorder %v55_v42, %v626_v12 }
  0x37   :  { %457 = vmatpush3.bf16.msra.mxu0 %v454_v16  ;;  %485 = vmatpush3.bf16.msra.mxu1 %v454_v16 }
  0x38   :  { %459 = vmatprep.subr.bf16.mxu0 %v458_v19  ;;  %478 = vmatprep.subr.bf16.mxu1 %v458_v19 }
  0x3b   :  { %461 = vmatpush3.bf16.msra.mxu0 %v458_v19  ;;  %486 = vmatpush3.bf16.msra.mxu1 %v458_v19 }
  0x3c   :  { %463 = vmatprep.subr.bf16.mxu0 %v462_v22  ;;  %479 = vmatprep.subr.bf16.mxu1 %v462_v22 }
  0x3f   :  { %465 = vmatpush3.bf16.msra.mxu0 %v462_v22  ;;  %487 = vmatpush3.bf16.msra.mxu1 %v462_v22 }
  0x40   :  { %467 = vmatprep.subr.bf16.mxu0 %v466_v25  ;;  %480 = vmatprep.subr.bf16.mxu1 %v466_v25 }
  0x43   :  { %469 = vmatpush3.bf16.msra.mxu0 %v466_v25  ;;  %488 = vmatpush3.bf16.msra.mxu1 %v466_v25 }
  0x44   :  { %471 = vmatprep.subr.bf16.mxu0 %v470_v28  ;;  %481 = vmatprep.subr.bf16.mxu1 %v470_v28 }
  0x47   :  { %473 = vmatpush3.bf16.msra.mxu0 %v470_v28  ;;  %489 = vmatpush3.bf16.msra.mxu1 %v470_v28 }
  0x4a   :  { %419 = vmatmul.mubr.msk.f32.vlgmr.msra.gmra.mrb[0].mxu0 %vm79_vm2, %v572_v15  ;;  %431 = vmatmul.mubr.msk.f32.vlgmr.msra.gmra.mrb[0].mxu1 %vm87_vm3, %v572_v15 }
  0x4b   :  { %421 = vmatprep.mubr.msk.f32.mxu0 %vm80_vm4, %v572_v15  ;;  %433 = vmatprep.mubr.msk.f32.mxu1 %vm88_vm5, %v572_v15 }
  0x4e   :  { %422 = vmatmul.mubr.msk.f32.gmra.mrb[2].mxu0 %vm81_vm6, %v572_v15  ;;  %434 = vmatmul.mubr.msk.f32.gmra.mrb[2].mxu1 %vm89_vm7, %v572_v15 }
  0x4f   :  { %424 = vmatprep.mubr.msk.f32.mxu0 %vm82_vm8, %v572_v15  ;;  %436 = vmatprep.mubr.msk.f32.mxu1 %vm90_vm9, %v572_v15 }
  0x52   :  { %425 = vmatmul.mubr.msk.f32.gmra.mrb[4].mxu0 %vm83_vm10, %v572_v15  ;;  %437 = vmatmul.mubr.msk.f32.gmra.mrb[4].mxu1 %vm91_vm11, %v572_v15 }
  0x53   :  { %427 = vmatprep.mubr.msk.f32.mxu0 %vm84_vm12, %v572_v15  ;;  %439 = vmatprep.mubr.msk.f32.mxu1 %vm92_vm13, %v572_v15 }
  0x56   :  { %428 = vmatmul.mubr.msk.f32.gmra.mrb[6].mxu0 %vm85_vm14, %v572_v15  ;;  %440 = vmatmul.mubr.msk.f32.gmra.mrb[6].mxu1 %vm93_vm15, %v572_v15 }
 0x11d   :  { %v420_v43 = vpop.f32.mrb[0].mxu0  ;;  %v432_v44 = vpop.f32.mrb[0].mxu1 }
 0x11e   :  { %288 = vst [vmem:[#allocation7 + $0x8] sm:$0xff] %v420_v43  ;;  %296 = vst [vmem:[#allocation7 + $0x48] sm:$0xff] %v432_v44  ;;  %v208_v45 = vpop.f32.mrb[1].mxu0  ;;  %v248_v46 = vpop.f32.mrb[1].mxu1 }
 0x11f   :  { %287 = vst [vmem:[#allocation7] sm:$0xff] %v208_v45  ;;  %295 = vst [vmem:[#allocation7 + $0x40] sm:$0xff] %v248_v46 }
 0x121   :  { %v423_v47 = vpop.f32.mrb[2].mxu0  ;;  %v435_v48 = vpop.f32.mrb[2].mxu1 }
 0x122   :  { %290 = vst [vmem:[#allocation7 + $0x18] sm:$0xff] %v423_v47  ;;  %298 = vst [vmem:[#allocation7 + $0x58] sm:$0xff] %v435_v48  ;;  %v218_v49 = vpop.f32.mrb[3].mxu0  ;;  %v258_v50 = vpop.f32.mrb[3].mxu1 }
 0x123   :  { %289 = vst [vmem:[#allocation7 + $0x10] sm:$0xff] %v218_v49  ;;  %297 = vst [vmem:[#allocation7 + $0x50] sm:$0xff] %v258_v50 }
 0x125   :  { %v426_v51 = vpop.f32.mrb[4].mxu0  ;;  %v438_v52 = vpop.f32.mrb[4].mxu1 }
 0x126   :  { %292 = vst [vmem:[#allocation7 + $0x28] sm:$0xff] %v426_v51  ;;  %300 = vst [vmem:[#allocation7 + $0x68] sm:$0xff] %v438_v52  ;;  %v228_v53 = vpop.f32.mrb[5].mxu0  ;;  %v268_v54 = vpop.f32.mrb[5].mxu1 }
 0x127   :  { %291 = vst [vmem:[#allocation7 + $0x20] sm:$0xff] %v228_v53  ;;  %299 = vst [vmem:[#allocation7 + $0x60] sm:$0xff] %v268_v54 }
 0x129   :  { %v429_v55 = vpop.f32.mrb[6].mxu0  ;;  %v441_v56 = vpop.f32.mrb[6].mxu1 }
 0x12a   :  { %294 = vst [vmem:[#allocation7 + $0x38] sm:$0xff] %v429_v55  ;;  %302 = vst [vmem:[#allocation7 + $0x78] sm:$0xff] %v441_v56  ;;  %v238_v57 = vpop.f32.mrb[7].mxu0  ;;  %v278_v58 = vpop.f32.mrb[7].mxu1 }
 0x12b   :  { %293 = vst [vmem:[#allocation7 + $0x30] sm:$0xff] %v238_v57  ;;  %301 = vst [vmem:[#allocation7 + $0x70] sm:$0xff] %v278_v58 }
 0x12c   :  { %551 = shalt.err (!%p548_p6)
}
 0x12d   :  { %s552_s11 = scalar_lea.hbm %s692_s2, 2048 }
 0x12e   :  { %p553_p7 = scmp.ne.s32.totalorder %s692_s2, %s552_s11  ;;  %p556_p8 = scmp.lt.u32.totalorder %s552_s11, %s692_s2 }
 0x130   :  { %p558_p9 = pnand %p556_p8, %p553_p7 }
 0x132   :  { %561 = shalt.err (!%p558_p9)
}
 0x133   :  { %314 = dma.vmem_to_hbm [thread:$0]  %s309_s7, 2048, %s692_s2, [#allocation4], %s570_s0, %s570_s0, %s571_s4  }
 0x134   :  { %566 = dma.done.wait [#allocation4], 2048  }
 0x135   :  { %567 = vsyncadd [#allocation4], 4294965248 }
 0x136   :  { %318 = vsyncpa [#allocation3], 1 }
 0x137   :  { %319 = vsyncpa [#allocation6], 1 }
 0x138   :  { %320 = vsyncpa [#allocation4], 1 }

</bundles_post_ra>
